<compile_context>
chip_gen: v6e
topology: v6e:2x2x1
jax: 0.10.0
libtpu: 0.0.40
codegen_flags: <defaults>
</compile_context>

<pallas_src>
import jax
import jax.numpy as jnp
from jax.experimental import pallas as pl
from jax.experimental.pallas import tpu as pltpu

LANE = 128
SUBLANE = 8
MAX_TILE_BYTES = 1 << 20  # ~1 MiB per operand tile -> ~8 MiB total double-buffered


def fusion_kernel(w1_ref, w2_ref, w3_ref, s1_ref, s2_ref, s3_ref, o_ref):
    # s*_ref blocks: (rows_blk, hw_blk); w*_ref blocks: (rows_blk, 1) broadcast over lanes.
    o_ref[...] = (s1_ref[...] * w1_ref[...]
                  + s2_ref[...] * w2_ref[...]
                  + s3_ref[...] * w3_ref[...])


def _round_up(x, m):
    return ((x + m - 1) // m) * m


def _largest_aligned_divisor(total, unit, cap):
    """Largest multiple of `unit` dividing `total` (a multiple of `unit`), <= max(cap, unit)."""
    cap = max(cap, unit)
    best = unit
    d = unit
    limit = min(total, cap)
    while d <= limit:
        if total % d == 0:
            best = d
        d += unit
    return best


def fusion_model(seg1, seg2, seg3, w1, w2, w3):
    """seg*: (N, C, H, W) float32; w*: (C, 1, 1) float32.
    Returns (N, C, H, W) = seg1*w1 + seg2*w2 + seg3*w3 (broadcast over H, W)."""
    N, C, H, W = seg1.shape
    HW = H * W
    rows = N * C
    dtype = seg1.dtype
    itemsize = jnp.dtype(dtype).itemsize

    rows_p = _round_up(rows, SUBLANE)
    hw_p = _round_up(HW, LANE)

    def flat_pad(seg):
        s = seg.reshape(rows, HW)
        if rows_p != rows or hw_p != HW:
            s = jnp.pad(s, ((0, rows_p - rows), (0, hw_p - HW)))
        return s

    def row_weights(w):
        # Row r of the flattened (N*C, HW) slab corresponds to channel r % C.
        wr = jnp.tile(w.reshape(1, C).astype(dtype), (N, 1)).reshape(rows, 1)
        if rows_p != rows:
            wr = jnp.pad(wr, ((0, rows_p - rows), (0, 0)))
        return wr

    s1, s2, s3 = flat_pad(seg1), flat_pad(seg2), flat_pad(seg3)
    w1r, w2r, w3r = row_weights(w1), row_weights(w2), row_weights(w3)

    # Tile selection: biggest lane-dense HW chunk first, then as many rows as fit the budget.
    hw_blk = _largest_aligned_divisor(hw_p, LANE, MAX_TILE_BYTES // (SUBLANE * itemsize))
    rows_budget = max(SUBLANE, MAX_TILE_BYTES // (hw_blk * itemsize))
    rows_blk = _largest_aligned_divisor(rows_p, SUBLANE, rows_budget)

    # Ensure >= 2 grid steps when the data allows it (keeps both v7x TensorCores busy).
    if rows_p // rows_blk == 1 and hw_p // hw_blk == 1:
        if rows_p >= 2 * SUBLANE:
            rows_blk = _largest_aligned_divisor(rows_p, SUBLANE, rows_p // 2)
        elif hw_p >= 2 * LANE:
            hw_blk = _largest_aligned_divisor(hw_p, LANE, hw_p // 2)

    grid = (rows_p // rows_blk, hw_p // hw_blk)

    seg_spec = pl.BlockSpec((rows_blk, hw_blk), lambda r, h: (r, h))
    w_spec = pl.BlockSpec((rows_blk, 1), lambda r, h: (r, 0))

    out = pl.pallas_call(
        fusion_kernel,
        out_shape=jax.ShapeDtypeStruct((rows_p, hw_p), dtype),
        grid_spec=pltpu.PrefetchScalarGridSpec(
            num_scalar_prefetch=0,
            grid=grid,
            in_specs=[w_spec, w_spec, w_spec, seg_spec, seg_spec, seg_spec],
            out_specs=seg_spec,
        ),
        compiler_params=pltpu.CompilerParams(
            dimension_semantics=("parallel", "parallel"),
        ),
    )(w1r, w2r, w3r, s1, s2, s3)

    return out[:rows, :HW].reshape(N, C, H, W)


if __name__ == "__main__":
    # Small shapes consistent with the module: class_num=8, batch=2, 16x16 maps.
    N, C, H, W = 2, 8, 16, 16

    key = jax.random.PRNGKey(0)
    k1, k2, k3, kw1, kw2, kw3 = jax.random.split(key, 6)

    seg1 = jax.random.normal(k1, (N, C, H, W), dtype=jnp.float32)
    seg2 = jax.random.normal(k2, (N, C, H, W), dtype=jnp.float32)
    seg3 = jax.random.normal(k3, (N, C, H, W), dtype=jnp.float32)

    # "np.random.rand"-style params in [0, 1), shape (C, 1, 1).
    w1 = jax.random.uniform(kw1, (C, 1, 1), dtype=jnp.float32)
    w2 = jax.random.uniform(kw2, (C, 1, 1), dtype=jnp.float32)
    w3 = jax.random.uniform(kw3, (C, 1, 1), dtype=jnp.float32)

    out = fusion_model(seg1, seg2, seg3, w1, w2, w3)
    out = jax.block_until_ready(out)

    # Reference check (plain JAX broadcasting, same as PyTorch semantics).
    ref = seg1 * w1 + seg2 * w2 + seg3 * w3
    assert out.shape == (N, C, H, W)
    assert jnp.allclose(out, ref, atol=1e-6, rtol=1e-6)

    print("KERNEL_OK")
</pallas_src>

<mosaic_0001>
module attributes {stable_mosaic.version = 11 : i64} {
  func.func @fusion_kernel(%arg0: i32, %arg1: i32, %arg2: memref<8x1xf32, #tpu.memory_space<vmem>>, %arg3: memref<8x1xf32, #tpu.memory_space<vmem>>, %arg4: memref<8x1xf32, #tpu.memory_space<vmem>>, %arg5: memref<8x256xf32, #tpu.memory_space<vmem>>, %arg6: memref<8x256xf32, #tpu.memory_space<vmem>>, %arg7: memref<8x256xf32, #tpu.memory_space<vmem>>, %arg8: memref<8x256xf32, #tpu.memory_space<vmem>>) attributes {dimension_semantics = [#tpu.dimension_semantics<parallel>, #tpu.dimension_semantics<parallel>], iteration_bounds = array<i64: 2, 1>, scalar_prefetch = 0 : i64, scratch_operands = 0 : i64, tpu.core_type = #tpu.core_type<tc>, window_params = [{transform_indices = @transform_0, window_bounds = array<i64: 8, 1>}, {transform_indices = @transform_1, window_bounds = array<i64: 8, 1>}, {transform_indices = @transform_2, window_bounds = array<i64: 8, 1>}, {transform_indices = @transform_3, window_bounds = array<i64: 8, 256>}, {transform_indices = @transform_4, window_bounds = array<i64: 8, 256>}, {transform_indices = @transform_5, window_bounds = array<i64: 8, 256>}, {transform_indices = @transform_6, window_bounds = array<i64: 8, 256>}]} {
    %c0 = arith.constant 0 : index
    %c0_0 = arith.constant 0 : index
    %0 = vector.load %arg5[%c0, %c0_0] : memref<8x256xf32, #tpu.memory_space<vmem>>, vector<8x256xf32>
    %c0_1 = arith.constant 0 : index
    %c0_2 = arith.constant 0 : index
    %1 = vector.load %arg2[%c0_1, %c0_2] : memref<8x1xf32, #tpu.memory_space<vmem>>, vector<8x1xf32>
    %2 = vector.broadcast %1 : vector<8x1xf32> to vector<8x256xf32>
    %3 = arith.mulf %0, %2 : vector<8x256xf32>
    %c0_3 = arith.constant 0 : index
    %c0_4 = arith.constant 0 : index
    %4 = vector.load %arg6[%c0_3, %c0_4] : memref<8x256xf32, #tpu.memory_space<vmem>>, vector<8x256xf32>
    %c0_5 = arith.constant 0 : index
    %c0_6 = arith.constant 0 : index
    %5 = vector.load %arg3[%c0_5, %c0_6] : memref<8x1xf32, #tpu.memory_space<vmem>>, vector<8x1xf32>
    %6 = vector.broadcast %5 : vector<8x1xf32> to vector<8x256xf32>
    %7 = arith.mulf %4, %6 : vector<8x256xf32>
    %8 = arith.addf %3, %7 : vector<8x256xf32>
    %c0_7 = arith.constant 0 : index
    %c0_8 = arith.constant 0 : index
    %9 = vector.load %arg7[%c0_7, %c0_8] : memref<8x256xf32, #tpu.memory_space<vmem>>, vector<8x256xf32>
    %c0_9 = arith.constant 0 : index
    %c0_10 = arith.constant 0 : index
    %10 = vector.load %arg4[%c0_9, %c0_10] : memref<8x1xf32, #tpu.memory_space<vmem>>, vector<8x1xf32>
    %11 = vector.broadcast %10 : vector<8x1xf32> to vector<8x256xf32>
    %12 = arith.mulf %9, %11 : vector<8x256xf32>
    %13 = arith.addf %8, %12 : vector<8x256xf32>
    %c0_11 = arith.constant 0 : index
    %c0_12 = arith.constant 0 : index
    %14 = vector.load %arg8[%c0_11, %c0_12] : memref<8x256xf32, #tpu.memory_space<vmem>>, vector<8x256xf32>
    tpu.vector_store %arg8[%c0_11, %c0_12], %13 {strides = array<i32>} : memref<8x256xf32, #tpu.memory_space<vmem>>, vector<8x256xf32>,
    return
  }
  func.func @transform_0(%arg0: i32, %arg1: i32) -> (i32, i32) {
    %c0_i32 = arith.constant 0 : i32
    %c0_i32_0 = arith.constant 0 : i32
    return %arg0, %c0_i32 : i32, i32
  }
  func.func @transform_1(%arg0: i32, %arg1: i32) -> (i32, i32) {
    %c0_i32 = arith.constant 0 : i32
    %c0_i32_0 = arith.constant 0 : i32
    return %arg0, %c0_i32 : i32, i32
  }
  func.func @transform_2(%arg0: i32, %arg1: i32) -> (i32, i32) {
    %c0_i32 = arith.constant 0 : i32
    %c0_i32_0 = arith.constant 0 : i32
    return %arg0, %c0_i32 : i32, i32
  }
  func.func @transform_3(%arg0: i32, %arg1: i32) -> (i32, i32) {
    %c0_i32 = arith.constant 0 : i32
    return %arg0, %arg1 : i32, i32
  }
  func.func @transform_4(%arg0: i32, %arg1: i32) -> (i32, i32) {
    %c0_i32 = arith.constant 0 : i32
    return %arg0, %arg1 : i32, i32
  }
  func.func @transform_5(%arg0: i32, %arg1: i32) -> (i32, i32) {
    %c0_i32 = arith.constant 0 : i32
    return %arg0, %arg1 : i32, i32
  }
  func.func @transform_6(%arg0: i32, %arg1: i32) -> (i32, i32) {
    %c0_i32 = arith.constant 0 : i32
    return %arg0, %arg1 : i32, i32
  }
}

</mosaic_0001>

<bundles_post_ra>
// kernel: tpu_custom_call.1
= control target key start
LH: loop header
LB: loop body
LE: loop exit
PB: predicated region body
PF: predicated region fallthrough
CT: control target
= control target key end

     0   :  { %s1100_s0 = inlined_call_operand.vmem [shape: f32[16,1], index: 0, kind: input, shape index: {}]   ;;  %s1101_s1 = inlined_call_operand.vmem [shape: f32[16,1], index: 1, kind: input, shape index: {}]   ;;  %s1102_s2 = inlined_call_operand.vmem [shape: f32[16,1], index: 2, kind: input, shape index: {}]   ;;  %s1103_s3 = inlined_call_operand.vmem [shape: f32[16,256], index: 3, kind: input, shape index: {}]   ;;  %s1104_s4 = inlined_call_operand.hbm [shape: f32[16,256], index: 4, kind: input, shape index: {}]   ;;  %s1105_s5 = inlined_call_operand.hbm [shape: f32[16,256], index: 5, kind: input, shape index: {}]   ;;  %s1106_s6 = inlined_call_operand.hbm [shape: f32[16,256], index: 6, kind: output, shape index: {}]  }
   0x1   :  { %1109 = sst [smem:[#allocation13_spill]] %s1104_s4 }
   0x2   :  { %1110 = sst [smem:[#allocation14_spill]] %s1105_s5 }
   0x3   :  { %11 = vsyncpa [#allocation3], 0 }
   0x4   :  { %13 = vsyncpa [#allocation3 + $0x1], 0 }
   0x5   :  { %14 = vsyncpa [#allocation6], 0 }
   0x6   :  { %16 = vsyncpa [#allocation6 + $0x1], 0 }
   0x7   :  { %17 = vsyncpa [#allocation4], 0 }
   0x8   :  { %19 = vsyncpa [#allocation4 + $0x1], 0  ;;  %s914_s21 = smov 0   ;;  %s916_s22 = smov 0  }
   0x9   :  { %s918_s23 = smov 0   ;;  %s920_s24 = smov 0  }
   0xa   :  { %s922_s25 = smov 0   ;;  %s924_s26 = smov 0  }
   0xb LB: > { %1111 = sst [smem:[#allocation11_spill]] %s869_s25  ;;  %s635_s27 = sadd.s32 4294967295, %s873_s26   ;;  %s873_s26 = sphi %s924_s26, %s25_s26   ;;  %s869_s25 = sphi %s922_s25, %s1123_s25   ;;  %s865_s24 = sphi %s920_s24, %s1122_s24   ;;  %s861_s23 = sphi %s918_s23, %s1126_s23   ;;  %s857_s22 = sphi %s916_s22, %s1125_s22   ;;  %s853_s21 = sphi %s914_s21, %s1124_s21  }
   0xc   : > { %s636_s28 = sadd.s32 4294967294, %s873_s26   ;;  %s37_s29 = sadd.s32 1, %s869_s25 }
   0xd   : > { %s152_s30 = sadd.s32 1, %s861_s23  ;;  %p39_p0 = scmp.ge.s32.totalorder %s37_s29, 2 }
   0xe   : > { %p159_p1 = scmp.ne.s32.totalorder %s861_s23, %s857_s22  ;;  %p160_p2 = scmp.eq.s32.totalorder %s873_s26, 0 }
   0xf   : > { %p165_p3 = scmp.ne.s32.totalorder %s857_s22, %s853_s21  ;;  %s1128_s29 = smov (%p39_p0, %s37_s29), 0 }
  0x10   : > { %1112 = sst [smem:[#allocation12_spill]] %s1128_s29  ;;  %p955_p4 = por %p160_p2, %p159_p1 }
  0x11   : > { %p166_p5 = scmp.eq.s32.totalorder %s635_s27, 0  ;;  %s147_s8 = ssub.s32 %s869_s25, %s1128_s29 }
  0x12   : > { %p219_p6 = scmp.eq.s32.totalorder %s635_s27, 1  ;;  %p150_p7 = scmp.eq.s32.totalorder %s147_s8, 0 }
  0x13   : > { %p961_p8 = por %p166_p5, %p165_p3  ;;  %p225_p10 = scmp.eq.s32.totalorder %s636_s28, 1 }
  0x14   : > { %p965_p9 = por %p219_p6, %p159_p1  ;;  %p680_p13 = scmp.lt.s32.totalorder %s873_s26, 2 }
  0x15   : > { %s970_s11 = scalar_select %p150_p7, %s861_s23, %s152_s30  }
  0x16   : > { %p972_p11 = por %p225_p10, %p165_p3  ;;  %s979_s13 = sand.u32 1, %s861_s23  }
  0x17   : > { %s639_s14 = sshll.u32 %s979_s13, 4  ;;  %s659_s15 = sshll.u32 %s869_s25, 8 }
  0x18   : > { %s1117_s4 = sld [smem:[#allocation13_spill]]  ;;  %s283_s19 = scalar_lea.vmem [#allocation2], %s639_s14 }
  0x19   : > { %s293_s20 = sshll.u32 %s283_s19, 4  ;;  %p988_p0 = pnand %p680_p13, %p955_p4  ;;  %s294_s20 = int_to_ptr.vmem [resolvable:$true] %s293_s20 }
  0x1a   : > { %p645_p1 = scmp.ge.s32.totalorder %s873_s26, 1  ;;  %p319_p2 = scmp.lt.s32.totalorder %s873_s26, 3 }
  0x1b   : > { %s280_s28 = scalar_lea.sflag [#allocation3], %s979_s13  ;;  %p735_p3 = pneg %p988_p0 }
  0x1c   : > { %s746_s30 = scalar_lea.vmem %s294_s20, 256  ;;  %s875_s8 = smov [#allocation2]  }
  0x1d   : > { %p747_p5 = scmp.ne.s32.totalorder %s294_s20, %s746_s30  ;;  %s751_s16 = sshll.u32 %s875_s8, 4  ;;  %s752_s16 = int_to_ptr.vmem [resolvable:$false] %s751_s16 }
  0x1e   : > { %s291_s18 = scalar_lea.hbm %s1117_s4, %s659_s15  ;;  %s753_s7 = scalar_lea.vmem %s752_s16, 512 }
  0x1f   : > { %p749_p6 = pnand %p747_p5, %p735_p3  ;;  %p754_p4 = scmp.lt.s32.totalorder %s294_s20, %s752_s16 }
  0x20   : > { %p755_p10 = scmp.lt.s32.totalorder %s753_s7, %s746_s30 }
  0x21   : > { %p750_p7 = pneg %p749_p6 }
  0x22   : > { %p756_p13 = por %p755_p10, %p754_p4 }
  0x24   : > { %p757_p12 = pnand %p756_p13, %p750_p7 }
  0x26   : > { %760 = shalt.err (!%p757_p12)
}
  0x27   : > { %672 = dma.hbm_to_vmem [thread:$0]  (!%p988_p0), %s291_s18, 256, %s294_s20, %s280_s28  }
  0x28   : > { %p1006_p5 = pnand %p645_p1, %p319_p2  ;;  %s1120_s5 = sld [smem:[#allocation14_spill]] }
  0x29   : > { %s304_s16 = scalar_lea.vmem [#allocation5], %s639_s14  ;;  %s301_s4 = scalar_lea.sflag [#allocation6], %s979_s13 }
  0x2a   : > { %s314_s7 = sshll.u32 %s304_s16, 4  ;;  %s876_s18 = smov [#allocation5]   ;;  %s315_s7 = int_to_ptr.vmem [resolvable:$true] %s314_s7 }
  0x2b   : > { %s774_s29 = scalar_lea.vmem %s315_s7, 256  ;;  %s779_s20 = sshll.u32 %s876_s18, 4  ;;  %s780_s20 = int_to_ptr.vmem [resolvable:$false] %s779_s20 }
  0x2c   : > { %p775_p12 = scmp.ne.s32.totalorder %s315_s7, %s774_s29  ;;  %s781_s28 = scalar_lea.vmem %s780_s20, 512 }
  0x2d   : > { %p782_p1 = scmp.lt.s32.totalorder %s315_s7, %s780_s20  ;;  %p783_p2 = scmp.lt.s32.totalorder %s781_s28, %s774_s29 }
  0x2e   : > { %s312_s30 = scalar_lea.hbm %s1120_s5, %s659_s15  ;;  %p777_p6 = pnand %p775_p12, %p735_p3 }
  0x2f   : > { %p784_p4 = por %p783_p2, %p782_p1 }
  0x30   : > { %p778_p7 = pneg %p777_p6 }
  0x32   : > { %p785_p10 = pnand %p784_p4, %p778_p7 }
  0x34   : > { %788 = shalt.err (!%p785_p10)
}
  0x35   : > { %675 = dma.hbm_to_vmem [thread:$0]  (!%p988_p0), %s312_s30, 256, %s315_s7, %s301_s4  }
  0x36   : > { %323 = sbr.rel (%p1006_p5) target bundleno = 216 (0xd8), region = 44  ;;  %s1022_s13 = sand.u32 (!%p1006_p5), 1, %s857_s22  }
  0x37   : > { %s1025_s14 = sshll.u32 (!%p1006_p5), %s1022_s13, 4  ;;  %s326_s15 = scalar_lea.sflag (!%p1006_p5), [#allocation3], %s1022_s13 }
  0x38   : > { %s329_s29 = scalar_lea.vmem (!%p1006_p5), [#allocation2], %s1025_s14 }
  0x3b   : > { %840 = dma.done.wait (%p961_p8), %s326_s15, 256  }
  0x3c   : > { %842 = vsyncadd (%p961_p8), %s326_s15, 4294967040  ;;  %s335_s4 = scalar_lea.sflag [#allocation6], %s1022_s13  ;;  %s338_s27 = scalar_lea.vmem [#allocation5], %s1025_s14 }
  0x3d   : > { %844 = dma.done.wait (%p961_p8), %s335_s4, 256  }
  0x3e   : > { %846 = vsyncadd (%p961_p8), %s335_s4, 4294967040  ;;  %p393_p0 = scmp.lt.s32.totalorder %s865_s24, 1  ;;  %v877_v0 = vmov 0   ;;  %v428_v7 = vld [vmem:[%s329_s29] sm:$0xff]  ;;  %v429_v8 = vld [vmem:[%s329_s29 + $0x8] sm:$0xff]  ;;  %s662_s5 = sshll.u32 %s865_s24, 8 }
  0x3f   : > { %731 = vset.pattern.permute.xlu0 %v877_v0  ;;  %732 = vset.pattern.permute.xlu1 %v877_v0  ;;  %v440_v10 = vld [vmem:[%s338_s27] sm:$0xff]  ;;  %v441_v11 = vld [vmem:[%s338_s27 + $0x8] sm:$0xff]  ;;  %s392_s25 = scalar_lea.vmem [#allocation7], %s1025_s14  ;;  %s1058_s27 = scalar_lea.hbm %s1106_s6, %s662_s5 }
  0x40   : > { %s394_s17 = scalar_select %p393_p0, %s865_s24, 1 }
  0x41   : > { %s455_s30 = scalar_lea.sflag [#allocation4], %s1022_s13  ;;  %s878_s24 = smov [#allocation7]  }
  0x42   : > { %s649_s19 = sshll.u32 %s394_s17, 3  ;;  %s661_s4 = sshll.u32 %s394_s17, 4 }
  0x43   : > { %s396_s16 = scalar_lea.vmem %s1100_s0, %s649_s19  ;;  %s400_s20 = scalar_lea.vmem %s1101_s1, %s649_s19 }
  0x44   : > { %s404_s9 = scalar_lea.vmem %s1102_s2, %s649_s19  ;;  %v420_v1 = vld [vmem:[%s396_s16] sm:$0xff]  ;;  %s413_s8 = scalar_lea.vmem %s1103_s3, %s661_s4 }
  0x45   : > { %v442_v2 = vld [vmem:[%s404_s9] sm:$0xff]  ;;  %423 = vperm.xlu0 %731, %v420_v1   ;;  %v419_v6 = vld [vmem:[%s413_s8 + $0x8] sm:$0xff]  ;;  %s471_s17 = sshll.u32 %s392_s25, 4  ;;  %s793_s14 = sshll.u32 %s878_s24, 4  ;;  %s472_s17 = int_to_ptr.vmem [resolvable:$true] %s471_s17  ;;  %s794_s14 = int_to_ptr.vmem [resolvable:$false] %s793_s14 }
  0x46   : > { %445 = vperm.xlu1 %732, %v442_v2   ;;  %v430_v3 = vld [vmem:[%s400_s20] sm:$0xff]  ;;  %s789_s16 = scalar_lea.vmem %s472_s17, 256  ;;  %s795_s7 = scalar_lea.vmem %s794_s14, 512 }
  0x47   : > { %v418_v5 = vld [vmem:[%s413_s8] sm:$0xff]  ;;  %p790_p8 = scmp.ne.s32.totalorder %s472_s17, %s789_s16  ;;  %p796_p5 = scmp.lt.s32.totalorder %s472_s17, %s794_s14 }
  0x48   : > { %p797_p12 = scmp.lt.s32.totalorder %s795_s7, %s789_s16 }
  0x49   : > { %433 = vperm.xlu0 %731, %v430_v3   ;;  %p791_p3 = pnand %p790_p8, %p965_p9 }
  0x4a   : > { %p798_p6 = por %p797_p12, %p796_p5 }
  0x4b   : > { %p792_p13 = pneg %p791_p3 }
  0x4d   : > { %p799_p7 = pnand %p798_p6, %p792_p13 }
  0xc0   : > { %v424_v4 = vpop.permute.xlu0 %423 }
  0xc1   : > { %v446_v9 = vpop.permute.xlu1 %445  ;;  %v426_v12 = vmul.f32 %v424_v4, %v418_v5  ;;  %v427_v13 = vmul.f32 %v424_v4, %v419_v6 }
  0xc2   : > { %v448_v17 = vmul.f32 %v446_v9, %v440_v10  ;;  %v449_v18 = vmul.f32 %v446_v9, %v441_v11 }
  0xc4   : > { %v434_v14 = vpop.permute.xlu0 %433 }
  0xc5   : > { %v436_v15 = vmul.f32 %v434_v14, %v428_v7  ;;  %v437_v16 = vmul.f32 %v434_v14, %v429_v8 }
  0xc7   : > { %v438_v19 = vadd.f32 %v436_v15, %v426_v12  ;;  %v439_v20 = vadd.f32 %v437_v16, %v427_v13 }
  0xc9   : > { %v450_v21 = vadd.f32 %v448_v17, %v438_v19  ;;  %v451_v22 = vadd.f32 %v449_v18, %v439_v20 }
  0xcb   : > { %452 = vst [vmem:[%s392_s25] sm:$0xff] %v450_v21  ;;  %453 = vst [vmem:[%s392_s25 + $0x8] sm:$0xff] %v451_v22 }
  0xcc   : > { %802 = shalt.err (!%p799_p7)
}
  0xcd   : > { %s803_s18 = scalar_lea.hbm %s1058_s27, 256  ;;  %s807_s28 = scalar_lea.hbm %s1106_s6, 512 }
  0xce   : > { %p804_p1 = scmp.ne.s32.totalorder %s1058_s27, %s803_s18  ;;  %p808_p10 = scmp.lt.s32.totalorder %s1058_s27, %s1106_s6 }
  0xcf   : > { %p809_p0 = scmp.lt.s32.totalorder %s807_s28, %s803_s18 }
  0xd0   : > { %p805_p2 = pnand %p804_p1, %p965_p9 }
  0xd1   : > { %p810_p8 = por %p809_p0, %p808_p10 }
  0xd2   : > { %p806_p4 = pneg %p805_p2 }
  0xd4   : > { %p811_p3 = pnand %p810_p8, %p806_p4 }
  0xd6   : > { %814 = shalt.err (!%p811_p3)
}
  0xd7   : > { %667 = dma.vmem_to_hbm [thread:$0]  (%p965_p9), %s472_s17, 256, %s1058_s27, %s455_s30  }
  0xd8 PF: > { %s483_s4 = sand.u32 1, %s853_s21   ;;  %p1121_p13 = scmp.ge.s32.totalorder %s873_s26, 2 }
  0xd9   : > { %s484_s8 = scalar_lea.sflag [#allocation4], %s483_s4 }
  0xda   : > { %p677_p5 = pnand %p1121_p13, %p972_p11 }
  0xdc   : > { %p678_p12 = pneg %p677_p5 }
  0xde   : > { %848 = dma.done.wait (%p678_p12), %s484_s8, 256  }
  0xdf   : > { %850 = vsyncadd (%p678_p12), %s484_s8, 4294967040  ;;  %s25_s26 = sadd.s32 1, %s873_s26   ;;  %s1122_s24 = sld [smem:[#allocation11_spill]] }
  0xe0   : > { %p22_p6 = scmp.ge.s32.totalorder %s25_s26, 4   ;;  %s1123_s25 = sld [smem:[#allocation12_spill]] }
  0xe1   : > { %s1124_s21 = smov %s857_s22  ;;  %s1125_s22 = smov %s861_s23 }
  0xe2   : > { %s1126_s23 = smov %s970_s11  ;;  %24 = sbr.rel (!%p22_p6) target bundleno = 11 (0xb), region = 114 }
  0xe7   :  { %489 = vsyncpa [#allocation3], 1 }
  0xe8   :  { %491 = vsyncpa [#allocation3 + $0x1], 1 }
  0xe9   :  { %492 = vsyncpa [#allocation6], 1 }
  0xea   :  { %494 = vsyncpa [#allocation6 + $0x1], 1 }
  0xeb   :  { %495 = vsyncpa [#allocation4], 1 }
  0xec   :  { %497 = vsyncpa [#allocation4 + $0x1], 1 }

</bundles_post_ra>
